<compile_context>
chip_gen: v5e
topology: v5e:2x2
jax: 0.10.0
libtpu: 0.0.40
codegen_flags: <defaults>
</compile_context>

<pallas_src>
import math

import jax
import jax.numpy as jnp
from jax.experimental import pallas as pl
from jax.experimental.pallas import tpu as pltpu


def _round_up(x, m):
    return ((x + m - 1) // m) * m


def _mlp_kernel(s_ref, o_ref, d_ref, p_ref,
                w1s_ref, w1o_ref, w1d_ref, w1p_ref,
                b1_ref, w2_ref, b2_ref, out_ref):
    bf = jnp.bfloat16
    # First layer: concat fused as four partial dots against W1 row-blocks.
    # Activations are f32 in VMEM; cast to bf16 on the VPU right before the MXU.
    h = jnp.dot(s_ref[...].astype(bf), w1s_ref[...],
                preferred_element_type=jnp.float32)
    h = h + jnp.dot(o_ref[...].astype(bf), w1o_ref[...],
                    preferred_element_type=jnp.float32)
    h = h + jnp.dot(d_ref[...].astype(bf), w1d_ref[...],
                    preferred_element_type=jnp.float32)
    h = h + jnp.dot(p_ref[...].astype(bf), w1p_ref[...],
                    preferred_element_type=jnp.float32)
    # Bias + ReLU in f32 on the VPU; h is a lane-dense [TM, 128] tile.
    h = jnp.maximum(h + b1_ref[...], 0.0)
    # Second layer: bf16 MXU, f32 accumulation + f32 bias; narrow 16-lane store.
    out = jnp.dot(h.astype(bf), w2_ref[...],
                  preferred_element_type=jnp.float32) + b2_ref[...]
    out_ref[...] = out.astype(out_ref.dtype)


def prepare_params(params, d_model):
    """One-time weight prep: pad hidden dim to 128 lanes, split W1 rows per
    concatenated input (fuses the concat into the kernel), cast to bf16."""
    w1, b1, w2, b2 = params["w1"], params["b1"], params["w2"], params["b2"]
    hidden = w1.shape[1]
    num_relations = w2.shape[1]
    h_pad = _round_up(hidden, 128)
    bf = jnp.bfloat16
    w1p = jnp.pad(w1, ((0, 0), (0, h_pad - hidden))).astype(bf)
    w2p = jnp.pad(w2, ((0, h_pad - hidden), (0, 0))).astype(bf)
    b1p = jnp.pad(b1.reshape(1, hidden),
                  ((0, 0), (0, h_pad - hidden))).astype(jnp.float32)
    b2p = b2.reshape(1, num_relations).astype(jnp.float32)
    return {
        "w1_s": w1p[0:d_model],
        "w1_o": w1p[d_model:2 * d_model],
        "w1_d": w1p[2 * d_model:3 * d_model],
        "w1_p": w1p[3 * d_model:],
        "b1": b1p,
        "w2": w2p,
        "b2": b2p,
    }


def triplet_decoder_forward(subject_feats, object_feats, decoder_states,
                            pairwise_feats, prepared, *, block_m=2048):
    """Forward pass of TripletDecoder. Concat + Linear + ReLU + Linear fused."""
    d_model = subject_feats.shape[-1]
    n_pair = pairwise_feats.shape[-1]
    lead_shape = subject_feats.shape[:-1]

    h_pad = prepared["w2"].shape[0]
    num_relations = prepared["w2"].shape[1]
    in_features = 3 * d_model + n_pair

    # ---- flatten leading dims to rows (metadata-only reshape, no HBM pass) ----
    M = 1
    for s in lead_shape:
        M *= int(s)
    s2 = subject_feats.reshape(M, d_model)
    o2 = object_feats.reshape(M, d_model)
    d2 = decoder_states.reshape(M, d_model)
    p2 = pairwise_feats.reshape(M, n_pair)

    # ---- tile M; no jnp.pad of the remainder: boundary-tile garbage rows are
    # row-independent and the partial output block write is masked by Pallas. ----
    tm = min(block_m, _round_up(M, 8))
    grid_m = pl.cdiv(M, tm)
    if grid_m < 2 and M >= 16:
        # Ensure >= 2 grid tiles so both TensorCores get work on multi-TC chips.
        tm = _round_up(pl.cdiv(M, 2), 8)
        grid_m = pl.cdiv(M, tm)

    def row_spec(d):
        return pl.BlockSpec((tm, d), lambda i: (i, 0))

    def full_spec(shape):
        return pl.BlockSpec(shape, lambda i: (0, 0))

    flops = 2 * M * (in_features * h_pad + h_pad * num_relations)
    bytes_accessed = (
        M * in_features * 4                                   # f32 input rows
        + (in_features * h_pad + h_pad * num_relations) * 2   # bf16 weights
        + (h_pad + num_relations) * 4                         # f32 biases
        + M * num_relations * 4                               # f32 output
    )

    out = pl.pallas_call(
        _mlp_kernel,
        out_shape=jax.ShapeDtypeStruct((M, num_relations), jnp.float32),
        grid_spec=pltpu.PrefetchScalarGridSpec(
            num_scalar_prefetch=0,
            grid=(grid_m,),
            in_specs=[
                row_spec(d_model), row_spec(d_model), row_spec(d_model),
                row_spec(n_pair),
                full_spec((d_model, h_pad)), full_spec((d_model, h_pad)),
                full_spec((d_model, h_pad)), full_spec((n_pair, h_pad)),
                full_spec((1, h_pad)),
                full_spec((h_pad, num_relations)),
                full_spec((1, num_relations)),
            ],
            out_specs=pl.BlockSpec((tm, num_relations), lambda i: (i, 0)),
        ),
        compiler_params=pltpu.CompilerParams(
            dimension_semantics=("parallel",),
            vmem_limit_bytes=32 * 1024 * 1024,
        ),
        cost_estimate=pl.CostEstimate(
            flops=flops, transcendentals=0, bytes_accessed=bytes_accessed),
    )(s2, o2, d2, p2,
      prepared["w1_s"], prepared["w1_o"], prepared["w1_d"], prepared["w1_p"],
      prepared["b1"], prepared["w2"], prepared["b2"])

    return out.reshape(*lead_shape, num_relations)


def init_params(key, in_features, hidden_features, num_relations, dtype=jnp.float32):
    """Deterministic synthetic init matching nn.Linear shapes (weights stored transposed)."""
    k1, k2, k3, k4 = jax.random.split(key, 4)
    lim1 = 1.0 / math.sqrt(in_features)
    lim2 = 1.0 / math.sqrt(hidden_features)
    return {
        "w1": jax.random.uniform(k1, (in_features, hidden_features), dtype, -lim1, lim1),
        "b1": jax.random.uniform(k2, (hidden_features,), dtype, -lim1, lim1),
        "w2": jax.random.uniform(k3, (hidden_features, num_relations), dtype, -lim2, lim2),
        "b2": jax.random.uniform(k4, (num_relations,), dtype, -lim2, lim2),
    }


if __name__ == "__main__":
    # Small "args": d_model=32, num_pairwise_features=32, num_relations=16
    d_model = 32
    num_pairwise_features = 32
    num_relations = 16
    in_features = d_model * 3 + num_pairwise_features               # 128
    hidden_features = 2 ** math.floor(
        math.log2((in_features * num_relations) ** 0.5))            # 32

    batch, seq = 2, 8

    key = jax.random.PRNGKey(0)
    k_s, k_o, k_d, k_p, k_params = jax.random.split(key, 5)

    subject_feats = jax.random.normal(k_s, (batch, seq, d_model), jnp.float32)
    object_feats = jax.random.normal(k_o, (batch, seq, d_model), jnp.float32)
    decoder_states = jax.random.normal(k_d, (batch, seq, d_model), jnp.float32)
    pairwise_feats = jax.random.normal(k_p, (batch, seq, num_pairwise_features), jnp.float32)

    params = init_params(k_params, in_features, hidden_features, num_relations)
    prepared = prepare_params(params, d_model)   # one-time weight prep (hoisted)

    fwd = jax.jit(triplet_decoder_forward)
    out = fwd(subject_feats, object_feats, decoder_states, pairwise_feats, prepared)
    out = jax.block_until_ready(out)
    assert out.shape == (batch, seq, num_relations)
    assert out.dtype == jnp.float32

    # Reference 1: same bf16-quantization path in plain JAX (tight tolerance).
    x_bf = jnp.concatenate(
        [subject_feats, object_feats, decoder_states, pairwise_feats],
        axis=-1).astype(jnp.bfloat16)
    w1_bf = params["w1"].astype(jnp.bfloat16)
    w2_bf = params["w2"].astype(jnp.bfloat16)
    h_ref = jnp.maximum(
        jnp.dot(x_bf, w1_bf, preferred_element_type=jnp.float32) + params["b1"], 0.0)
    ref_bf = jnp.dot(h_ref.astype(jnp.bfloat16), w2_bf,
                     preferred_element_type=jnp.float32) + params["b2"]
    assert jnp.allclose(out, ref_bf, atol=5e-3, rtol=5e-3), \
        float(jnp.max(jnp.abs(out - ref_bf)))

    # Reference 2: full-f32 math (loose tolerance accounts for bf16 quantization).
    x_f32 = jnp.concatenate(
        [subject_feats, object_feats, decoder_states, pairwise_feats], axis=-1)
    ref_f32 = jnp.maximum(x_f32 @ params["w1"] + params["b1"], 0.0) \
        @ params["w2"] + params["b2"]
    assert jnp.allclose(out, ref_f32, atol=5e-2, rtol=5e-2), \
        float(jnp.max(jnp.abs(out - ref_f32)))

    print("KERNEL_OK")
</pallas_src>

<mosaic_0001>
module attributes {stable_mosaic.version = 11 : i64} {
  func.func @_mlp_kernel(%arg0: i32, %arg1: memref<8x32xf32, #tpu.memory_space<vmem>>, %arg2: memref<8x32xf32, #tpu.memory_space<vmem>>, %arg3: memref<8x32xf32, #tpu.memory_space<vmem>>, %arg4: memref<8x32xf32, #tpu.memory_space<vmem>>, %arg5: memref<32x128xbf16, #tpu.memory_space<vmem>>, %arg6: memref<32x128xbf16, #tpu.memory_space<vmem>>, %arg7: memref<32x128xbf16, #tpu.memory_space<vmem>>, %arg8: memref<32x128xbf16, #tpu.memory_space<vmem>>, %arg9: memref<1x128xf32, #tpu.memory_space<vmem>>, %arg10: memref<128x16xbf16, #tpu.memory_space<vmem>>, %arg11: memref<1x16xf32, #tpu.memory_space<vmem>>, %arg12: memref<8x16xf32, #tpu.memory_space<vmem>>) attributes {dimension_semantics = [#tpu.dimension_semantics<parallel>], iteration_bounds = array<i64: 2>, scalar_prefetch = 0 : i64, scratch_operands = 0 : i64, tpu.core_type = #tpu.core_type<tc>, window_params = [{transform_indices = @transform_0, window_bounds = array<i64: 8, 32>}, {transform_indices = @transform_1, window_bounds = array<i64: 8, 32>}, {transform_indices = @transform_2, window_bounds = array<i64: 8, 32>}, {transform_indices = @transform_3, window_bounds = array<i64: 8, 32>}, {pipeline_mode = #tpu.pipeline_mode<synchronous>, transform_indices = @transform_4, window_bounds = array<i64: 32, 128>}, {pipeline_mode = #tpu.pipeline_mode<synchronous>, transform_indices = @transform_5, window_bounds = array<i64: 32, 128>}, {pipeline_mode = #tpu.pipeline_mode<synchronous>, transform_indices = @transform_6, window_bounds = array<i64: 32, 128>}, {pipeline_mode = #tpu.pipeline_mode<synchronous>, transform_indices = @transform_7, window_bounds = array<i64: 32, 128>}, {pipeline_mode = #tpu.pipeline_mode<synchronous>, transform_indices = @transform_8, window_bounds = array<i64: 1, 128>}, {pipeline_mode = #tpu.pipeline_mode<synchronous>, transform_indices = @transform_9, window_bounds = array<i64: 128, 16>}, {pipeline_mode = #tpu.pipeline_mode<synchronous>, transform_indices = @transform_10, window_bounds = array<i64: 1, 16>}, {transform_indices = @transform_11, window_bounds = array<i64: 8, 16>}]} {
    %c0 = arith.constant 0 : index
    %c0_0 = arith.constant 0 : index
    %0 = vector.load %arg1[%c0, %c0_0] : memref<8x32xf32, #tpu.memory_space<vmem>>, vector<8x32xf32>
    %1 = arith.truncf %0 : vector<8x32xf32> to vector<8x32xbf16>
    %c0_1 = arith.constant 0 : index
    %c0_2 = arith.constant 0 : index
    %2 = vector.load %arg5[%c0_1, %c0_2] : memref<32x128xbf16, #tpu.memory_space<vmem>>, vector<32x128xbf16>
    %cst = arith.constant dense<0.000000e+00> : vector<8x128xf32>
    %3 = tpu.matmul %1, %2, %cst {dimension_numbers = #tpu.dot_dimension_numbers<[1], [0], [0], [1], [0, 0, 1, 1], [], []>} : vector<8x32xbf16>, vector<32x128xbf16>, vector<8x128xf32> -> vector<8x128xf32>
    %c0_3 = arith.constant 0 : index
    %c0_4 = arith.constant 0 : index
    %4 = vector.load %arg2[%c0_3, %c0_4] : memref<8x32xf32, #tpu.memory_space<vmem>>, vector<8x32xf32>
    %5 = arith.truncf %4 : vector<8x32xf32> to vector<8x32xbf16>
    %c0_5 = arith.constant 0 : index
    %c0_6 = arith.constant 0 : index
    %6 = vector.load %arg6[%c0_5, %c0_6] : memref<32x128xbf16, #tpu.memory_space<vmem>>, vector<32x128xbf16>
    %cst_7 = arith.constant dense<0.000000e+00> : vector<8x128xf32>
    %7 = tpu.matmul %5, %6, %cst_7 {dimension_numbers = #tpu.dot_dimension_numbers<[1], [0], [0], [1], [0, 0, 1, 1], [], []>} : vector<8x32xbf16>, vector<32x128xbf16>, vector<8x128xf32> -> vector<8x128xf32>
    %8 = arith.addf %3, %7 : vector<8x128xf32>
    %c0_8 = arith.constant 0 : index
    %c0_9 = arith.constant 0 : index
    %9 = vector.load %arg3[%c0_8, %c0_9] : memref<8x32xf32, #tpu.memory_space<vmem>>, vector<8x32xf32>
    %10 = arith.truncf %9 : vector<8x32xf32> to vector<8x32xbf16>
    %c0_10 = arith.constant 0 : index
    %c0_11 = arith.constant 0 : index
    %11 = vector.load %arg7[%c0_10, %c0_11] : memref<32x128xbf16, #tpu.memory_space<vmem>>, vector<32x128xbf16>
    %cst_12 = arith.constant dense<0.000000e+00> : vector<8x128xf32>
    %12 = tpu.matmul %10, %11, %cst_12 {dimension_numbers = #tpu.dot_dimension_numbers<[1], [0], [0], [1], [0, 0, 1, 1], [], []>} : vector<8x32xbf16>, vector<32x128xbf16>, vector<8x128xf32> -> vector<8x128xf32>
    %13 = arith.addf %8, %12 : vector<8x128xf32>
    %c0_13 = arith.constant 0 : index
    %c0_14 = arith.constant 0 : index
    %14 = vector.load %arg4[%c0_13, %c0_14] : memref<8x32xf32, #tpu.memory_space<vmem>>, vector<8x32xf32>
    %15 = arith.truncf %14 : vector<8x32xf32> to vector<8x32xbf16>
    %c0_15 = arith.constant 0 : index
    %c0_16 = arith.constant 0 : index
    %16 = vector.load %arg8[%c0_15, %c0_16] : memref<32x128xbf16, #tpu.memory_space<vmem>>, vector<32x128xbf16>
    %cst_17 = arith.constant dense<0.000000e+00> : vector<8x128xf32>
    %17 = tpu.matmul %15, %16, %cst_17 {dimension_numbers = #tpu.dot_dimension_numbers<[1], [0], [0], [1], [0, 0, 1, 1], [], []>} : vector<8x32xbf16>, vector<32x128xbf16>, vector<8x128xf32> -> vector<8x128xf32>
    %18 = arith.addf %13, %17 : vector<8x128xf32>
    %c0_18 = arith.constant 0 : index
    %c0_19 = arith.constant 0 : index
    %19 = vector.load %arg9[%c0_18, %c0_19] : memref<1x128xf32, #tpu.memory_space<vmem>>, vector<1x128xf32>
    %20 = vector.broadcast %19 : vector<1x128xf32> to vector<8x128xf32>
    %21 = arith.addf %18, %20 : vector<8x128xf32>
    %cst_20 = arith.constant 0.000000e+00 : f32
    %22 = vector.broadcast %cst_20 : f32 to vector<8x128xf32>
    %23 = arith.maximumf %21, %22 : vector<8x128xf32>
    %24 = arith.truncf %23 : vector<8x128xf32> to vector<8x128xbf16>
    %c0_21 = arith.constant 0 : index
    %c0_22 = arith.constant 0 : index
    %25 = vector.load %arg10[%c0_21, %c0_22] : memref<128x16xbf16, #tpu.memory_space<vmem>>, vector<128x16xbf16>
    %cst_23 = arith.constant dense<0.000000e+00> : vector<8x16xf32>
    %26 = tpu.matmul %24, %25, %cst_23 {dimension_numbers = #tpu.dot_dimension_numbers<[1], [0], [0], [1], [0, 0, 1, 1], [], []>} : vector<8x128xbf16>, vector<128x16xbf16>, vector<8x16xf32> -> vector<8x16xf32>
    %c0_24 = arith.constant 0 : index
    %c0_25 = arith.constant 0 : index
    %27 = vector.load %arg11[%c0_24, %c0_25] : memref<1x16xf32, #tpu.memory_space<vmem>>, vector<1x16xf32>
    %28 = vector.broadcast %27 : vector<1x16xf32> to vector<8x16xf32>
    %29 = arith.addf %26, %28 : vector<8x16xf32>
    %c0_26 = arith.constant 0 : index
    %c0_27 = arith.constant 0 : index
    %30 = vector.load %arg12[%c0_26, %c0_27] : memref<8x16xf32, #tpu.memory_space<vmem>>, vector<8x16xf32>
    tpu.vector_store %arg12[%c0_26, %c0_27], %29 {strides = array<i32>} : memref<8x16xf32, #tpu.memory_space<vmem>>, vector<8x16xf32>,
    return
  }
  func.func @transform_0(%arg0: i32) -> (i32, i32) {
    %c0_i32 = arith.constant 0 : i32
    %c0_i32_0 = arith.constant 0 : i32
    return %arg0, %c0_i32 : i32, i32
  }
  func.func @transform_1(%arg0: i32) -> (i32, i32) {
    %c0_i32 = arith.constant 0 : i32
    %c0_i32_0 = arith.constant 0 : i32
    return %arg0, %c0_i32 : i32, i32
  }
  func.func @transform_2(%arg0: i32) -> (i32, i32) {
    %c0_i32 = arith.constant 0 : i32
    %c0_i32_0 = arith.constant 0 : i32
    return %arg0, %c0_i32 : i32, i32
  }
  func.func @transform_3(%arg0: i32) -> (i32, i32) {
    %c0_i32 = arith.constant 0 : i32
    %c0_i32_0 = arith.constant 0 : i32
    return %arg0, %c0_i32 : i32, i32
  }
  func.func @transform_4(%arg0: i32) -> (i32, i32) {
    %c0_i32 = arith.constant 0 : i32
    %c0_i32_0 = arith.constant 0 : i32
    %c0_i32_1 = arith.constant 0 : i32
    return %c0_i32, %c0_i32_0 : i32, i32
  }
  func.func @transform_5(%arg0: i32) -> (i32, i32) {
    %c0_i32 = arith.constant 0 : i32
    %c0_i32_0 = arith.constant 0 : i32
    %c0_i32_1 = arith.constant 0 : i32
    return %c0_i32, %c0_i32_0 : i32, i32
  }
  func.func @transform_6(%arg0: i32) -> (i32, i32) {
    %c0_i32 = arith.constant 0 : i32
    %c0_i32_0 = arith.constant 0 : i32
    %c0_i32_1 = arith.constant 0 : i32
    return %c0_i32, %c0_i32_0 : i32, i32
  }
  func.func @transform_7(%arg0: i32) -> (i32, i32) {
    %c0_i32 = arith.constant 0 : i32
    %c0_i32_0 = arith.constant 0 : i32
    %c0_i32_1 = arith.constant 0 : i32
    return %c0_i32, %c0_i32_0 : i32, i32
  }
  func.func @transform_8(%arg0: i32) -> (i32, i32) {
    %c0_i32 = arith.constant 0 : i32
    %c0_i32_0 = arith.constant 0 : i32
    %c0_i32_1 = arith.constant 0 : i32
    return %c0_i32, %c0_i32_0 : i32, i32
  }
  func.func @transform_9(%arg0: i32) -> (i32, i32) {
    %c0_i32 = arith.constant 0 : i32
    %c0_i32_0 = arith.constant 0 : i32
    %c0_i32_1 = arith.constant 0 : i32
    return %c0_i32, %c0_i32_0 : i32, i32
  }
  func.func @transform_10(%arg0: i32) -> (i32, i32) {
    %c0_i32 = arith.constant 0 : i32
    %c0_i32_0 = arith.constant 0 : i32
    %c0_i32_1 = arith.constant 0 : i32
    return %c0_i32, %c0_i32_0 : i32, i32
  }
  func.func @transform_11(%arg0: i32) -> (i32, i32) {
    %c0_i32 = arith.constant 0 : i32
    %c0_i32_0 = arith.constant 0 : i32
    return %arg0, %c0_i32 : i32, i32
  }
}

</mosaic_0001>

<bundles_post_ra>
// kernel: triplet_decoder_forward.1
= control target key start
LH: loop header
LB: loop body
LE: loop exit
PB: predicated region body
PF: predicated region fallthrough
CT: control target
= control target key end

     0   :  { %s1579_s0 = inlined_call_operand.vmem [shape: f32[16,32], index: 0, kind: input, shape index: {}]   ;;  %s1580_s1 = inlined_call_operand.vmem [shape: f32[16,32], index: 1, kind: input, shape index: {}]   ;;  %s1581_s2 = inlined_call_operand.vmem [shape: f32[16,32], index: 2, kind: input, shape index: {}]   ;;  %s1582_s3 = inlined_call_operand.vmem [shape: f32[16,32], index: 3, kind: input, shape index: {}]   ;;  %s1583_s4 = inlined_call_operand.vmem [shape: bf16[32,128], index: 4, kind: input, shape index: {}]   ;;  %s1584_s5 = inlined_call_operand.hbm [shape: bf16[32,128], index: 5, kind: input, shape index: {}]   ;;  %s1585_s6 = inlined_call_operand.hbm [shape: bf16[32,128], index: 6, kind: input, shape index: {}]   ;;  %s1586_s7 = inlined_call_operand.hbm [shape: bf16[32,128], index: 7, kind: input, shape index: {}]   ;;  %s1587_s8 = inlined_call_operand.hbm [shape: f32[1,128], index: 8, kind: input, shape index: {}]   ;;  %s1588_s9 = inlined_call_operand.vmem [shape: bf16[128,16], index: 9, kind: input, shape index: {}]   ;;  %s1589_s10 = inlined_call_operand.hbm [shape: f32[1,16], index: 10, kind: input, shape index: {}]   ;;  %s1590_s11 = inlined_call_operand.hbm [shape: f32[16,16], index: 11, kind: output, shape index: {}]  }
   0x1   :  { %1596 = sst [smem:[#allocation21_spill]] %s1585_s6 }
   0x2   :  { %1597 = sst [smem:[#allocation22_spill]] %s1587_s8 }
   0x3   :  { %16 = vsyncpa [#allocation3], 0 }
   0x4   :  { %17 = vsyncpa [#allocation6], 0 }
   0x5   :  { %18 = vsyncpa [#allocation9], 0 }
   0x6   :  { %19 = vsyncpa [#allocation4], 0 }
   0x7   :  { %21 = vsyncpa [#allocation4 + $0x1], 0  ;;  %s1397_s17 = smov 0   ;;  %s1399_s18 = smov 0  }
   0x8   :  { %s1401_s19 = smov 0   ;;  %s1403_s20 = smov 0  }
   0x9 LB: > { %1598 = sst [smem:[#allocation16_spill]] %s1316_s17  ;;  %s1418_s21 = sadd.s32 4294967295, %s1328_s20   ;;  %s1328_s20 = sphi %s1403_s20, %s1611_s20   ;;  %s1324_s19 = sphi %s1401_s19, %s1613_s19   ;;  %s1320_s18 = sphi %s1399_s18, %s1615_s18   ;;  %s1316_s17 = sphi %s1397_s17, %s1614_s17  }
   0xa   : > { %1599 = sst [smem:[#allocation17_spill]] %s1324_s19  ;;  %s903_s22 = sadd.s32 4294967294, %s1328_s20  }
   0xb   : > { %s1422_s23 = sadd.s32 1, %s1328_s20   ;;  %s285_s24 = sadd.s32 1, %s1324_s19 }
   0xc   : > { %1600 = sst [smem:[#allocation18_spill]] %s1422_s23  ;;  %s282_s25 = ssub.s32 %s1328_s20, %s1422_s23 }
   0xd   : > { %p295_p0 = scmp.ne.s32.totalorder %s1324_s19, %s1320_s18  ;;  %p283_p1 = scmp.eq.s32.totalorder %s282_s25, 0 }
   0xe   : > { %p296_p2 = scmp.eq.s32.totalorder %s1418_s21, 1  ;;  %p301_p3 = scmp.ne.s32.totalorder %s1320_s18, %s1316_s17 }
   0xf   : > { %p302_p4 = scmp.eq.s32.totalorder %s903_s22, 1  ;;  %p904_p7 = scmp.ge.s32.totalorder %s1328_s20, 1 }
  0x10   : > { %s1433_s26 = scalar_select %p283_p1, %s1324_s19, %s285_s24  }
  0x11   : > { %p1435_p5 = por %p296_p2, %p295_p0  ;;  %p1439_p6 = por %p302_p4, %p301_p3 }
  0x12   : > { %1601 = sst [smem:[#allocation19_spill]] %s1433_s26  ;;  %p309_p8 = scmp.lt.s32.totalorder %s1328_s20, 3 }
  0x13   : > { %s1603_s28 = scalar_select %p1439_p6, 1, 0 }
  0x14   : > { %p1052_p9 = scmp.eq.s32.totalorder %s1418_s21, 0  ;;  %p1446_p10 = pnand %p904_p7, %p309_p8 }
  0x15   : > { %1604 = sst [smem:[#allocation20_spill]] %s1603_s28  ;;  %s1330_s24 = smov [#allocation5]  }
  0x16   : > { %s1606_s6 = sld [smem:[#allocation21_spill]]  ;;  %p1032_p11 = pneg %p1446_p10 }
  0x17   : > { %s1607_s8 = sld [smem:[#allocation22_spill]]  ;;  %s339_s25 = sshll.u32 %s1330_s24, 4  ;;  %s340_s25 = int_to_ptr.vmem [resolvable:$true] %s339_s25 }
  0x18   : > { %p1460_p12 = pnand %p1052_p9, %p1032_p11  ;;  %s1331_s30 = smov 64  }
  0x19   : > { %s1332_s12 = smov 4   ;;  %s323_s26 = sshll.u32 %s1584_s5, 4  ;;  %s324_s26 = int_to_ptr.hbm [resolvable:$true] %s323_s26 }
  0x1a   : > { %s351_s23 = sshll.u32 %s1586_s7, 4  ;;  %s1334_s28 = smov [#allocation2]   ;;  %s352_s23 = int_to_ptr.hbm [resolvable:$true] %s351_s23 }
  0x1b   : > { %s325_s17 = sshll.u32 %s1334_s28, 4  ;;  %s381_s15 = sshll.u32 %s1589_s10, 4  ;;  %s326_s17 = int_to_ptr.vmem [resolvable:$true] %s325_s17  ;;  %s382_s15 = int_to_ptr.hbm [resolvable:$true] %s381_s15 }
  0x1c   : > { %s337_s13 = sshll.u32 %s1606_s6, 4  ;;  %s1333_s6 = smov [#allocation8]   ;;  %s338_s13 = int_to_ptr.hbm [resolvable:$true] %s337_s13 }
  0x1d   : > { %s366_s16 = sshll.u32 %s1607_s8, 4  ;;  %s368_s14 = sshll.u32 %s1333_s6, 4  ;;  %s367_s16 = int_to_ptr.hbm [resolvable:$true] %s366_s16  ;;  %s369_s14 = int_to_ptr.vmem [resolvable:$true] %s368_s14 }
  0x1e   : > { %1038 = dma.hbm_to_vmem [thread:$0]  (!%p1460_p12), %s338_s13, 256, %s340_s25, [#allocation6], %s1331_s30, %s1331_s30, %s1332_s12  }
  0x1f   : > { %1044 = dma.hbm_to_vmem [thread:$0]  (!%p1460_p12), %s367_s16, 16, %s369_s14, [#allocation9]  }
  0x20   : > { %1035 = dma.hbm_to_vmem [thread:$0]  (!%p1460_p12), %s324_s26, 256, %s326_s17, [#allocation3], %s1331_s30, %s1331_s30, %s1332_s12  }
  0x21   : > { %s1335_s6 = smov [#allocation7]   ;;  %s1336_s16 = smov [#allocation10]  }
  0x22   : > { %s353_s13 = sshll.u32 %s1335_s6, 4  ;;  %s383_s19 = sshll.u32 %s1336_s16, 4  ;;  %s354_s13 = int_to_ptr.vmem [resolvable:$true] %s353_s13  ;;  %s384_s19 = int_to_ptr.vmem [resolvable:$true] %s383_s19 }
  0x23   : > { %1041 = dma.hbm_to_vmem [thread:$0]  (!%p1460_p12), %s352_s23, 256, %s354_s13, [#allocation6], %s1331_s30, %s1331_s30, %s1332_s12  }
  0x24   : > { %1047 = dma.hbm_to_vmem [thread:$0]  (!%p1460_p12), %s382_s15, 16, %s384_s19, [#allocation9]  }
  0x25   : > { %424 = sbr.rel (%p1446_p10) target bundleno = 345 (0x159), region = 64 }
  0x2a   : > { %1299 = dma.done.wait (%p1052_p9), [#allocation3], 256  }
  0x2b   : > { %1301 = vsyncadd (%p1052_p9), [#allocation3], 4294967040 }
  0x2c   : > { %1303 = dma.done.wait (%p1052_p9), [#allocation6], 512  }
  0x2d   : > { %1305 = vsyncadd (%p1052_p9), [#allocation6], 4294966784 }
  0x2e   : > { %1307 = dma.done.wait (%p1052_p9), [#allocation9], 32  }
  0x2f   : > { %1309 = vsyncadd (%p1052_p9), [#allocation9], 4294967264  ;;  %p496_p13 = scmp.lt.s32.totalorder %s1418_s21, 1  ;;  %v997_v0 = vld [vmem:[#allocation2 + $0x8] sm:$0xff]  ;;  %v999_v1 = vld [vmem:[#allocation5 + $0x8] sm:$0xff]  ;;  %vm537_vm0 = vcmask 261120  }
  0x30   : > { %v996_v2 = vld [vmem:[#allocation2] sm:$0xff]  ;;  %v1001_v3 = vld [vmem:[#allocation7 + $0x8] sm:$0xff]  ;;  %547 = vmatpush.bf16.msra.mxu1 %v997_v0  ;;  %609 = vmatpush.bf16.msra.mxu2 %v999_v1  ;;  %v998_v5 = vld [vmem:[#allocation5] sm:$0xff]  ;;  %s991_s26 = sshll.u32 %s1418_s21, 3  ;;  %vm740_vm1 = vcmask 130048   ;;  %s1274_s8 = scalar_lea.hbm %s1590_s11, 16 }
  0x31   : > { %s497_s17 = scalar_select %p496_p13, %s1418_s21, 1  ;;  %644 = vmatpush.bf16.msra.mxu3 %v1001_v3  ;;  %v995_v7 = vld [vmem:[%s1583_s4 + $0x8] sm:$0xff]  ;;  %v1000_v8 = vld [vmem:[#allocation7] sm:$0xff]  ;;  %v1009_v10 = vld [vmem:[%s1588_s9 + $0x38] sm:$0xff] }
  0x32   : > { %v994_v14 = vld [vmem:[%s1583_s4] sm:$0xff]  ;;  %727 = vmatpush.bf16.msra.mxu0 %v1009_v10  ;;  %v1008_v17 = vld [vmem:[%s1588_s9 + $0x30] sm:$0xff]  ;;  %v1007_v18 = vld [vmem:[%s1588_s9 + $0x28] sm:$0xff]  ;;  %s753_s30 = scalar_lea.hbm %s1590_s11, %s991_s26 }
  0x33   : > { %s1499_s23 = sshll.u32 %s497_s17, 3  ;;  %v1006_v19 = vld [vmem:[%s1588_s9 + $0x20] sm:$0xff]  ;;  %v1005_v20 = vld [vmem:[%s1588_s9 + $0x18] sm:$0xff]  ;;  %v1004_v21 = vld [vmem:[%s1588_s9 + $0x10] sm:$0xff]  ;;  %s493_s17 = sand.u32 1, %s1320_s18  }
  0x34   : > { %s503_s29 = scalar_lea.vmem %s1580_s1, %s1499_s23  ;;  %s507_s12 = scalar_lea.vmem %s1581_s2, %s1499_s23  ;;  %548 = vmatpush.bf16.msra.mxu1 %v996_v2  ;;  %610 = vmatpush.bf16.msra.mxu2 %v998_v5  ;;  %v1003_v22 = vld [vmem:[%s1588_s9 + $0x8] sm:$0xff]  ;;  %v1002_v23 = vld [vmem:[%s1588_s9] sm:$0xff]  ;;  %v1102_v33 = vld [vmem:[#allocation8] ss:$0 sm:$0xff] }
  0x35   : > { %s511_s6 = scalar_lea.vmem %s1582_s3, %s1499_s23  ;;  %v519_v4 = vld [vmem:[%s503_s29] sm:$0xff]  ;;  %645 = vmatpush.bf16.msra.mxu3 %v1000_v8  ;;  %s499_s28 = scalar_lea.vmem %s1579_s0, %s1499_s23  ;;  %v1103_v39 = vld [vmem:[#allocation10] ss:$0 sm:$0xff] }
  0x36   : > { %v582_v6 = vld [vmem:[%s507_s12] sm:$0xff]  ;;  %v520_v11 = vpack.c.bf16 %v519_v4, %v519_v4  ;;  %728 = vmatpush.bf16.msra.mxu0 %v1008_v17  ;;  %s757_s24 = sshll.u32 %s753_s30, 4  ;;  %s758_s24 = int_to_ptr.hbm [resolvable:$true] %s757_s24 }
  0x37   : > { %v617_v9 = vld [vmem:[%s511_s6] sm:$0xff]  ;;  %v583_v12 = vpack.c.bf16 %v582_v6, %v582_v6  ;;  %s743_s6 = scalar_lea.sflag [#allocation4], %s493_s17  ;;  %s1268_s23 = sshra.s32 %s758_s24, 4  ;;  %s1269_s23 = int_to_ptr.hbm [resolvable:$true] %s1268_s23 }
  0x38   : > { %v618_v13 = vpack.c.bf16 %v617_v9, %v617_v9  ;;  %575 = vmatpush.bf16.msrb.mxu1 %v995_v7  ;;  %v513_v15 = vld [vmem:[%s499_s28] sm:$0xff]  ;;  %s917_s28 = sshll.u32 %s493_s17, 3  ;;  %s1270_s21 = scalar_lea.hbm %s1269_s23, 8 }
  0x39   : > { %930 = vmatmul.msk.bf16.vlgmr.msra.gmra.mxu1 %vm537_vm0, %v520_v11  ;;  %948 = vmatmul.msk.bf16.vlgmr.msra.gmra.mxu2 %vm537_vm0, %v583_v12  ;;  %v514_v16 = vpack.c.bf16 %v513_v15, %v513_v15  ;;  %s495_s12 = scalar_lea.vmem [#allocation11], %s917_s28  ;;  %p1271_p0 = scmp.ne.s32.totalorder %s1269_s23, %s1270_s21 }
  0x3a   : > { %957 = vmatmul.msk.bf16.vlgmr.msra.gmra.mxu3 %vm537_vm0, %v618_v13  ;;  %729 = vmatpush.bf16.msra.mxu0 %v1007_v18  ;;  %s755_s14 = sshll.u32 %s495_s12, 4  ;;  %p1275_p3 = scmp.lt.s32.totalorder %s1269_s23, %s1590_s11  ;;  %s756_s14 = int_to_ptr.vmem [resolvable:$true] %s755_s14 }
  0x3b   : > { %p1272_p1 = pnand %p1271_p0, %p1435_p5  ;;  %p1276_p4 = scmp.lt.s32.totalorder %s1274_s8, %s1270_s21 }
  0x3c   : > { %576 = vmatpush.bf16.msrb.mxu1 %v994_v14 }
  0x3d   : > { %p1273_p2 = pneg %p1272_p1  ;;  %p1277_p7 = por %p1276_p4, %p1275_p3 }
  0x3e   : > { %730 = vmatpush.bf16.msra.mxu0 %v1006_v19 }
  0x3f   : > { %p1278_p8 = pnand %p1277_p7, %p1273_p2 }
  0x42   : > { %731 = vmatpush.bf16.msra.mxu0 %v1005_v20 }
  0x46   : > { %732 = vmatpush.bf16.msra.mxu0 %v1004_v21 }
  0x49   : > { %939 = vmatmul.msk.bf16.vlgmr.msrb.gmra.mxu1 %vm537_vm0, %v514_v16 }
  0x4a   : > { %733 = vmatpush.bf16.msra.mxu0 %v1003_v22 }
  0x4e   : > { %734 = vmatpush.bf16.msra.mxu0 %v1002_v23 }
  0xb6   : > { %v550_v24 = vpop.f32.mrf.mxu1 }
  0xbc   : > { %v612_v25 = vpop.f32.mrf.mxu2 }
  0xbd   : > { %v647_v26 = vpop.f32.mrf.mxu3 }
  0xbe   : > { %v552_v27 = vpop.f32.mrf.mxu1 }
  0xc4   : > { %v614_v28 = vpop.f32.mrf.mxu2 }
  0xc5   : > { %v649_v29 = vpop.f32.mrf.mxu3 }
  0xc6   : > { %v578_v30 = vpop.f32.mrf.mxu1 }
  0xc7   : > { %v579_v31 = vadd.f32 %v578_v30, %v550_v24 }
  0xc9   : > { %v616_v32 = vadd.f32 %v612_v25, %v579_v31 }
  0xcb   : > { %v651_v34 = vadd.f32 %v647_v26, %v616_v32 }
  0xcd   : > { %v656_v35 = vadd.f32 %v1102_v33, %v651_v34 }
  0xce   : > { %v580_v36 = vpop.f32.mrf.mxu1 }
  0xcf   : > { %v657_v37 = vmax.f32 %v656_v35, 0.0 }
  0xd1   : > { %v658_v38 = vpack.c.bf16 %v657_v37, %v657_v37 }
  0xd3   : > { %735 = vmatmul.bf16.vlgmr.msra.gmra.mxu0 %v658_v38 }
 0x150   : > { %v736_v40 = vpop.f32.mrf.mxu0 }
 0x151   : > { %v737_v41 = vadd.f32 %v1103_v39, %v736_v40 }
 0x153   : > { %741 = vst.msk [vmem:[%s495_s12] sm:$0xff] %vm740_vm1, %v737_v41 }
 0x154   : > { %1281 = shalt.err (!%p1278_p8)
}
 0x155   : > { %1030 = dma.vmem_to_hbm [thread:$0]  (%p1435_p5), %s756_s14, 128, %s758_s24, %s743_s6  }
 0x158   : > { %v738_v42 = vpop.f32.mrf.mxu0 }
 0x159 PF: > { %s1609_s19 = sld [smem:[#allocation16_spill]]  ;;  %p1062_p9 = scmp.ge.s32.totalorder %s1328_s20, 2 }
 0x15b   : > { %p1049_p10 = pnand %p1062_p9, %p1439_p6 }
 0x15d   : > { %p1050_p11 = pneg %p1049_p10 }
 0x15f   : > { %s769_s26 = sand.u32 1, %s1609_s19  }
 0x160   : > { %s770_s28 = scalar_lea.sflag [#allocation4], %s769_s26 }
 0x161   : > { %1311 = dma.done.wait (%p1050_p11), %s770_s28, 128  }
 0x162   : > { %1313 = vsyncadd (%p1050_p11), %s770_s28, 4294967168  ;;  %s1611_s20 = sld [smem:[#allocation18_spill]]  ;;  %s1614_s17 = smov %s1320_s18 }
 0x163   : > { %s1612_s29 = sld [smem:[#allocation17_spill]] }
 0x164   : > { %s1613_s19 = sld [smem:[#allocation19_spill]] }
 0x168   : > { %p24_p12 = scmp.ge.s32.totalorder %s1611_s20, 4  }
 0x169   : > { %s1615_s18 = smov %s1612_s29 }
 0x16a   :  { %26 = sbr.rel (!%p24_p12) target bundleno = 9 (0x9), region = 129 }
 0x16f   :  { %776 = vsyncpa [#allocation3], 1 }
 0x170   :  { %778 = vsyncpa [#allocation3 + $0x1], 1 }
 0x171   :  { %779 = vsyncpa [#allocation6], 1 }
 0x172   :  { %780 = vsyncpa [#allocation9], 1 }
 0x173   :  { %781 = vsyncpa [#allocation4], 1 }
 0x174   :  { %783 = vsyncpa [#allocation4 + $0x1], 1 }

</bundles_post_ra>
